<compile_context>
chip_gen: v5e
topology: v5e:2x2
jax: 0.10.0
libtpu: 0.0.40
codegen_flags: <defaults>
</compile_context>

<pallas_src>
import math
from functools import partial

import jax
import jax.numpy as jnp
from jax.experimental import pallas as pl
from jax.experimental.pallas import tpu as pltpu


def _round_up(v, m):
    return (v + m - 1) // m * m


def _vmem_capacity_bytes():
    """Physical VMEM per core (generation aware) with a conservative fallback."""
    try:
        cap = getattr(pltpu.get_tpu_info(), "vmem_capacity_bytes", None)
        if cap:
            return int(cap)
    except Exception:
        pass
    return 64 * 2 ** 20  # v7x-sized fallback


def _gcn_kernel(adj_ref, feat_ref, *refs, project, add_bias, feat_resident,
                tk, compute_dtype):
    """Tiled A @ feat with an f32 accumulator.

    grid = (batch, row_tile, k_tile); k is the contraction over nodes.
    refs layout (depends on compile-time flags): [w_ref] [b_ref] o_ref acc_ref
      adj_ref:  (tm, tk)                 adjacency tile (original dtype)
      feat_ref: (Nk, F_mid_p) resident   OR (tk, F_mid_p) streamed
      w_ref:    (F_mid_p, F_out_p)       only when project=True
      b_ref:    (1, F_out_p) f32         only when add_bias=True
      o_ref:    (tm, F_out_p)
      acc_ref:  (tm, acc_cols) f32 scratch
    """
    idx = 0
    w_ref = None
    b_ref = None
    if project:
        w_ref = refs[idx]
        idx += 1
    if add_bias:
        b_ref = refs[idx]
        idx += 1
    o_ref, acc_ref = refs[idx], refs[idx + 1]

    k = pl.program_id(2)

    @pl.when(k == 0)
    def _init():
        acc_ref[...] = jnp.zeros_like(acc_ref)

    # Adjacency cast happens in-kernel (free VPU filler in a mem-bound kernel)
    # instead of a pre-pass that re-writes N^2 elements to HBM.
    adj_tile = adj_ref[...]
    if adj_tile.dtype != compute_dtype:
        adj_tile = adj_tile.astype(compute_dtype)

    # Resident feature operand: slice the k-tile out of the full VMEM block.
    if feat_resident and feat_ref.shape[0] != tk:
        start = pl.multiple_of(k * tk, tk)
        feat_tile = feat_ref[pl.ds(start, tk), :]
    else:
        feat_tile = feat_ref[...]

    acc_ref[...] += jnp.dot(adj_tile, feat_tile,
                            preferred_element_type=jnp.float32)

    @pl.when(k == pl.num_programs(2) - 1)
    def _finalize():
        res = acc_ref[...]
        if project:
            # Small epilogue matmul, once per output tile, f32 accumulate.
            # Accumulator is downcast to the compute dtype instead of
            # upcasting W to f32 (avoids multi-pass f32 MXU work).
            res = jnp.dot(res.astype(compute_dtype), w_ref[...],
                          preferred_element_type=jnp.float32)
        if add_bias:
            res = res + b_ref[...]
        o_ref[...] = res.astype(o_ref.dtype)


def graph_convolution(x, adj, weight, bias=None, *,
                      block_m=1024, block_k=1024,
                      compute_dtype=jnp.bfloat16,
                      out_dtype=None):
    """Pallas implementation of GraphConvolution.forward(input, adj)."""
    B, N, F_in = x.shape
    F_out = weight.shape[1]
    assert adj.shape == (B, N, N)
    assert weight.shape == (F_in, F_out)
    out_dtype = out_dtype or x.dtype
    cdt = jnp.dtype(compute_dtype)

    add_bias = bias is not None
    # Dominant cost is N^2 * (inner feature width); contract against the smaller
    # of F_in / F_out:  (A @ X) @ W when F_out > F_in, else A @ (X @ W).
    project = F_out > F_in
    F_mid = F_in if project else F_out

    # Lane-dense feature padding (multiples of 128).
    F_out_p = _round_up(F_out, 128)
    F_mid_p = _round_up(F_mid, 128)

    # ---- tile selection ----
    sub_align = 16 if cdt.itemsize < 4 else 8   # packed bf16 sublane tile

    # For B == 1 keep >= 2 row tiles so both v7x TensorCores get work from the
    # two "parallel" grid axes.
    if B == 1 and N > sub_align:
        block_m = min(block_m, max(sub_align, _round_up((N + 1) // 2, sub_align)))

    if N <= block_m:
        tm = N                                   # full dim -> no alignment need
    else:
        tm = _round_up(min(block_m, N), sub_align)
    if N <= block_k:
        tk = N                                   # full dim -> no alignment need
    else:
        tk = _round_up(min(block_k, N), 128)

    Nr = _round_up(N, tm)   # padded rows of adj / output
    Nk = _round_up(N, tk)   # padded cols of adj / rows of feat

    # ---- adjacency operand: avoid the HBM cast/pad round trip when possible ----
    if Nr != N or Nk != N:
        # Padding is unavoidable; fold the cast into the same pass so the
        # re-written copy is half the bytes.
        adj_in = jnp.pad(adj.astype(cdt), ((0, 0), (0, Nr - N), (0, Nk - N)))
    else:
        adj_in = adj   # original dtype; cast inside the kernel

    # ---- feature operand (X or X @ W), padded & cast outside (it is small) ----
    prec = None if cdt.itemsize < 4 else jax.lax.Precision.HIGHEST
    if project:
        feat = x.astype(cdt)
        if Nk != N or F_mid_p != F_in:
            feat = jnp.pad(feat, ((0, 0), (0, Nk - N), (0, F_mid_p - F_in)))
        w_p = weight.astype(cdt)
        if F_mid_p != F_in or F_out_p != F_out:
            w_p = jnp.pad(w_p, ((0, F_mid_p - F_in), (0, F_out_p - F_out)))
    else:
        # Hoisted support = X @ W as one well-shaped XLA matmul.
        w_cols = weight.astype(cdt)
        if F_out_p != F_out:
            w_cols = jnp.pad(w_cols, ((0, 0), (0, F_out_p - F_out)))
        feat = jnp.matmul(x.astype(cdt), w_cols,
                          preferred_element_type=jnp.float32,
                          precision=prec).astype(cdt)
        if Nk != N:
            feat = jnp.pad(feat, ((0, 0), (0, Nk - N), (0, 0)))
        w_p = None

    b_p = None
    if add_bias:
        b_p = jnp.pad(bias.reshape(1, F_out).astype(jnp.float32),
                      ((0, 0), (0, F_out_p - F_out)))

    # Keep the (small) feature slab resident in VMEM across row/k tiles when it
    # fits a few MiB: it is then DMA'd once per batch instead of once per row tile.
    feat_resident = (Nk * F_mid_p * cdt.itemsize) <= (8 * 2 ** 20)

    # ---- grid & specs ----
    in_specs = [
        pl.BlockSpec((None, tm, tk), lambda b, i, k: (b, i, k)),            # adj
    ]
    if feat_resident:
        in_specs.append(pl.BlockSpec((None, Nk, F_mid_p),
                                     lambda b, i, k: (b, 0, 0)))            # feat (resident)
    else:
        in_specs.append(pl.BlockSpec((None, tk, F_mid_p),
                                     lambda b, i, k: (b, k, 0)))            # feat (streamed)
    operands = [adj_in, feat]
    if project:
        in_specs.append(pl.BlockSpec((F_mid_p, F_out_p), lambda b, i, k: (0, 0)))
        operands.append(w_p)
    if add_bias:
        in_specs.append(pl.BlockSpec((1, F_out_p), lambda b, i, k: (0, 0)))
        operands.append(b_p)

    acc_cols = F_mid_p if project else F_out_p
    grid = (B, Nr // tm, Nk // tk)

    # ---- generation-aware VMEM budget (double-buffered operands + scratch) ----
    adj_isz = jnp.dtype(adj_in.dtype).itemsize
    csz = cdt.itemsize
    osz = jnp.dtype(out_dtype).itemsize
    feat_rows_blk = Nk if feat_resident else tk
    est = (2 * tm * tk * adj_isz
           + 2 * feat_rows_blk * F_mid_p * csz
           + 2 * tm * F_out_p * osz
           + tm * acc_cols * 4)
    if project:
        est += 2 * F_mid_p * F_out_p * csz
    if add_bias:
        est += 2 * F_out_p * 4
    budget = int(0.85 * _vmem_capacity_bytes())
    vmem_limit = int(max(min(2 * est, budget), min(32 * 2 ** 20, budget)))

    out_p = pl.pallas_call(
        partial(_gcn_kernel, project=project, add_bias=add_bias,
                feat_resident=feat_resident, tk=tk, compute_dtype=cdt),
        out_shape=jax.ShapeDtypeStruct((B, Nr, F_out_p), out_dtype),
        grid_spec=pltpu.PrefetchScalarGridSpec(
            num_scalar_prefetch=0,
            grid=grid,
            in_specs=in_specs,
            out_specs=pl.BlockSpec((None, tm, F_out_p), lambda b, i, k: (b, i, 0)),
            scratch_shapes=[pltpu.VMEM((tm, acc_cols), jnp.float32)],
        ),
        compiler_params=pltpu.CompilerParams(
            dimension_semantics=("parallel", "parallel", "arbitrary"),
            vmem_limit_bytes=vmem_limit,
        ),
    )(*operands)

    # Conditional un-pad (no-op slice is skipped entirely when aligned).
    if Nr == N and F_out_p == F_out:
        return out_p
    return out_p[:, :N, :F_out]


def init_params(key, in_features, out_features, use_bias):
    """Deterministic re-implementation of reset_parameters()."""
    stdv = 1.0 / math.sqrt(out_features)
    kw, kb = jax.random.split(key)
    weight = jax.random.uniform(kw, (in_features, out_features),
                                minval=-stdv, maxval=stdv, dtype=jnp.float32)
    bias = None
    if use_bias:
        bias = jax.random.uniform(kb, (1, 1, out_features),
                                  minval=-stdv, maxval=stdv, dtype=jnp.float32)
    return weight, bias


if __name__ == "__main__":
    key = jax.random.PRNGKey(0)
    k_x, k_adj, k_p, k_x2, k_adj2, k_p2 = jax.random.split(key, 6)
    HI = jax.lax.Precision.HIGHEST

    # ---- Tests 1 & 2: module-default small shapes, bf16 compute path ----
    B, N, F_in, F_out = 2, 16, 8, 32
    x = jax.random.normal(k_x, (B, N, F_in), dtype=jnp.float32)
    adj = jax.random.uniform(k_adj, (B, N, N), dtype=jnp.float32)

    # reference on bf16-quantized inputs (kernel casts to bf16, accumulates f32)
    x_q = x.astype(jnp.bfloat16).astype(jnp.float32)
    adj_q = adj.astype(jnp.bfloat16).astype(jnp.float32)

    # bias=False (module default)
    weight, bias = init_params(k_p, F_in, F_out, use_bias=False)
    w_q = weight.astype(jnp.bfloat16).astype(jnp.float32)
    out = graph_convolution(x, adj, weight, bias)
    jax.block_until_ready(out)
    ref = jnp.matmul(adj_q, jnp.matmul(x_q, w_q, precision=HI), precision=HI)
    assert out.shape == (B, N, F_out)
    assert jnp.allclose(out, ref, rtol=1e-2, atol=1e-2), "bf16 no-bias mismatch"

    # bias=True branch
    weight_b, bias_b = init_params(k_p, F_in, F_out, use_bias=True)
    wb_q = weight_b.astype(jnp.bfloat16).astype(jnp.float32)
    out_b = graph_convolution(x, adj, weight_b, bias_b)
    jax.block_until_ready(out_b)
    ref_b = jnp.matmul(adj_q, jnp.matmul(x_q, wb_q, precision=HI),
                       precision=HI) + bias_b
    assert jnp.allclose(out_b, ref_b, rtol=1e-2, atol=1e-2), "bf16 bias mismatch"

    # ---- Test 3: multi-tile grid, f32 compute, hoisted X@W path (F_out<=F_in)
    B2, N2, F_in2, F_out2 = 1, 256, 64, 32
    x2 = jax.random.normal(k_x2, (B2, N2, F_in2), dtype=jnp.float32)
    adj2 = jax.random.uniform(k_adj2, (B2, N2, N2), dtype=jnp.float32)
    w2, b2 = init_params(k_p2, F_in2, F_out2, use_bias=True)
    out2 = graph_convolution(x2, adj2, w2, b2, block_m=128, block_k=128,
                             compute_dtype=jnp.float32)
    jax.block_until_ready(out2)
    ref2 = jnp.matmul(adj2, jnp.matmul(x2, w2, precision=HI), precision=HI) + b2
    assert jnp.allclose(out2, ref2, rtol=5e-3, atol=5e-3), "f32 X@W-path mismatch"

    # ---- Test 4: multi-tile grid, f32 compute, fused (A@X)@W path (F_out>F_in)
    F_in3, F_out3 = 16, 64
    x3 = jax.random.normal(k_x2, (B2, N2, F_in3), dtype=jnp.float32)
    w3, _ = init_params(k_p2, F_in3, F_out3, use_bias=False)
    out3 = graph_convolution(x3, adj2, w3, None, block_m=128, block_k=128,
                             compute_dtype=jnp.float32)
    jax.block_until_ready(out3)
    ref3 = jnp.matmul(adj2, jnp.matmul(x3, w3, precision=HI), precision=HI)
    assert jnp.allclose(out3, ref3, rtol=5e-3, atol=5e-3), "f32 AXW-path mismatch"

    print("KERNEL_OK")
</pallas_src>

<mosaic_0001>
module attributes {stable_mosaic.version = 11 : i64} {
  func.func @_gcn_kernel(%arg0: i32, %arg1: i32, %arg2: i32, %arg3: memref<1x16x16xf32, #tpu.memory_space<vmem>>, %arg4: memref<1x16x128xbf16, #tpu.memory_space<vmem>>, %arg5: memref<128x128xbf16, #tpu.memory_space<vmem>>, %arg6: memref<1x16x128xf32, #tpu.memory_space<vmem>>, %arg7: memref<16x128xf32, #tpu.memory_space<vmem>>) attributes {dimension_semantics = [#tpu.dimension_semantics<parallel>, #tpu.dimension_semantics<parallel>, #tpu.dimension_semantics<arbitrary>], iteration_bounds = array<i64: 2, 1, 1>, scalar_prefetch = 0 : i64, scratch_operands = 1 : i64, tpu.core_type = #tpu.core_type<tc>, window_params = [{transform_indices = @transform_0, window_bounds = array<i64: 1, 16, 16>}, {transform_indices = @transform_1, window_bounds = array<i64: 1, 16, 128>}, {pipeline_mode = #tpu.pipeline_mode<synchronous>, transform_indices = @transform_2, window_bounds = array<i64: 128, 128>}, {transform_indices = @transform_3, window_bounds = array<i64: 1, 16, 128>}]} {
    %c0_i32 = arith.constant 0 : i32
    %0 = arith.cmpi eq, %arg2, %c0_i32 : i32
    %1 = arith.extui %0 : i1 to i32
    %c0_i32_0 = arith.constant 0 : i32
    %2 = arith.cmpi ne, %1, %c0_i32_0 : i32
    scf.if %2 {
      %cst_12 = arith.constant 0.000000e+00 : f32
      %15 = vector.broadcast %cst_12 : f32 to vector<16x128xf32>
      %c0_13 = arith.constant 0 : index
      %c0_14 = arith.constant 0 : index
      %16 = vector.load %arg7[%c0_13, %c0_14] : memref<16x128xf32, #tpu.memory_space<vmem>>, vector<16x128xf32>
      tpu.vector_store %arg7[%c0_13, %c0_14], %15 {strides = array<i32>} : memref<16x128xf32, #tpu.memory_space<vmem>>, vector<16x128xf32>,
    } else {
    }
    %c0 = arith.constant 0 : index
    %c0_1 = arith.constant 0 : index
    %c0_2 = arith.constant 0 : index
    %3 = vector.load %arg3[%c0, %c0_1, %c0_2] : memref<1x16x16xf32, #tpu.memory_space<vmem>>, vector<1x16x16xf32>
    %4 = vector.shape_cast %3 : vector<1x16x16xf32> to vector<16x16xf32>
    %5 = arith.truncf %4 : vector<16x16xf32> to vector<16x16xbf16>
    %c0_3 = arith.constant 0 : index
    %c0_4 = arith.constant 0 : index
    %c0_5 = arith.constant 0 : index
    %6 = vector.load %arg4[%c0_3, %c0_4, %c0_5] : memref<1x16x128xbf16, #tpu.memory_space<vmem>>, vector<1x16x128xbf16>
    %7 = vector.shape_cast %6 : vector<1x16x128xbf16> to vector<16x128xbf16>
    %c0_6 = arith.constant 0 : index
    %c0_7 = arith.constant 0 : index
    %8 = vector.load %arg7[%c0_6, %c0_7] : memref<16x128xf32, #tpu.memory_space<vmem>>, vector<16x128xf32>
    %cst = arith.constant dense<0.000000e+00> : vector<16x128xf32>
    %9 = tpu.matmul %5, %7, %cst {dimension_numbers = #tpu.dot_dimension_numbers<[1], [0], [0], [1], [0, 0, 1, 1], [], []>} : vector<16x16xbf16>, vector<16x128xbf16>, vector<16x128xf32> -> vector<16x128xf32>
    %10 = arith.addf %8, %9 : vector<16x128xf32>
    %c0_8 = arith.constant 0 : index
    %c0_9 = arith.constant 0 : index
    %11 = vector.load %arg7[%c0_8, %c0_9] : memref<16x128xf32, #tpu.memory_space<vmem>>, vector<16x128xf32>
    tpu.vector_store %arg7[%c0_8, %c0_9], %10 {strides = array<i32>} : memref<16x128xf32, #tpu.memory_space<vmem>>, vector<16x128xf32>,
    %c0_i32_10 = arith.constant 0 : i32
    %12 = arith.cmpi eq, %arg2, %c0_i32_10 : i32
    %13 = arith.extui %12 : i1 to i32
    %c0_i32_11 = arith.constant 0 : i32
    %14 = arith.cmpi ne, %13, %c0_i32_11 : i32
    scf.if %14 {
      %c0_12 = arith.constant 0 : index
      %c0_13 = arith.constant 0 : index
      %15 = vector.load %arg7[%c0_12, %c0_13] : memref<16x128xf32, #tpu.memory_space<vmem>>, vector<16x128xf32>
      %16 = arith.truncf %15 : vector<16x128xf32> to vector<16x128xbf16>
      %c0_14 = arith.constant 0 : index
      %c0_15 = arith.constant 0 : index
      %17 = vector.load %arg5[%c0_14, %c0_15] : memref<128x128xbf16, #tpu.memory_space<vmem>>, vector<128x128xbf16>
      %cst_16 = arith.constant dense<0.000000e+00> : vector<16x128xf32>
      %18 = tpu.matmul %16, %17, %cst_16 {dimension_numbers = #tpu.dot_dimension_numbers<[1], [0], [0], [1], [0, 0, 1, 1], [], []>} : vector<16x128xbf16>, vector<128x128xbf16>, vector<16x128xf32> -> vector<16x128xf32>
      %c0_17 = arith.constant 0 : index
      %c0_18 = arith.constant 0 : index
      %c0_19 = arith.constant 0 : index
      %19 = vector.load %arg6[%c0_17, %c0_18, %c0_19] : memref<1x16x128xf32, #tpu.memory_space<vmem>>, vector<1x16x128xf32>
      %20 = vector.shape_cast %19 : vector<1x16x128xf32> to vector<16x128xf32>
      %21 = vector.shape_cast %18 : vector<16x128xf32> to vector<1x16x128xf32>
      tpu.vector_store %arg6[%c0_17, %c0_18, %c0_19], %21 {strides = array<i32>} : memref<1x16x128xf32, #tpu.memory_space<vmem>>, vector<1x16x128xf32>,
    } else {
    }
    return
  }
  func.func @transform_0(%arg0: i32, %arg1: i32, %arg2: i32) -> (i32, i32, i32) {
    %c0_i32 = arith.constant 0 : i32
    return %arg0, %arg1, %arg2 : i32, i32, i32
  }
  func.func @transform_1(%arg0: i32, %arg1: i32, %arg2: i32) -> (i32, i32, i32) {
    %c0_i32 = arith.constant 0 : i32
    %c0_i32_0 = arith.constant 0 : i32
    %c0_i32_1 = arith.constant 0 : i32
    return %arg0, %c0_i32, %c0_i32_0 : i32, i32, i32
  }
  func.func @transform_2(%arg0: i32, %arg1: i32, %arg2: i32) -> (i32, i32) {
    %c0_i32 = arith.constant 0 : i32
    %c0_i32_0 = arith.constant 0 : i32
    %c0_i32_1 = arith.constant 0 : i32
    return %c0_i32, %c0_i32_0 : i32, i32
  }
  func.func @transform_3(%arg0: i32, %arg1: i32, %arg2: i32) -> (i32, i32, i32) {
    %c0_i32 = arith.constant 0 : i32
    %c0_i32_0 = arith.constant 0 : i32
    return %arg0, %arg1, %c0_i32 : i32, i32, i32
  }
}

</mosaic_0001>

<bundles_post_ra>
// kernel: tpu_custom_call.1
= control target key start
LH: loop header
LB: loop body
LE: loop exit
PB: predicated region body
PF: predicated region fallthrough
CT: control target
= control target key end

     0   :  { %s1085_s0 = inlined_call_operand.hbm [shape: f32[2,16,16], index: 0, kind: input, shape index: {}]   ;;  %s1086_s1 = inlined_call_operand.hbm [shape: bf16[2,16,128], index: 1, kind: input, shape index: {}]   ;;  %s1087_s2 = inlined_call_operand.hbm [shape: bf16[128,128], index: 2, kind: input, shape index: {}]   ;;  %s1088_s3 = inlined_call_operand.hbm [shape: f32[2,16,128], index: 3, kind: output, shape index: {}]  }
   0x1   :  { %1093 = sst [smem:[#allocation17_spill]] %s1085_s0 }
   0x2   :  { %1094 = sst [smem:[#allocation18_spill]] %s1087_s2 }
   0x3   :  { %8 = vsyncpa [#allocation4], 0 }
   0x4   :  { %10 = vsyncpa [#allocation4 + $0x1], 0 }
   0x5   :  { %11 = vsyncpa [#allocation7], 0 }
   0x6   :  { %13 = vsyncpa [#allocation7 + $0x1], 0 }
   0x7   :  { %14 = vsyncpa [#allocation5], 0 }
   0x8   :  { %16 = vsyncpa [#allocation5 + $0x1], 0  ;;  %s911_s12 = smov 0   ;;  %s913_s13 = smov 0  }
   0x9   :  { %s915_s14 = smov 0   ;;  %s917_s15 = smov 0  }
   0xa   :  { %s919_s16 = smov 0   ;;  %s921_s17 = smov 0  }
   0xb LB: > { %1095 = sst [smem:[#allocation14_spill]] %s870_s14  ;;  %s942_s18 = sadd.s32 4294967295, %s882_s17   ;;  %s882_s17 = sphi %s921_s17, %s22_s17   ;;  %s878_s16 = sphi %s919_s16, %s1114_s16   ;;  %s874_s15 = sphi %s917_s15, %s1113_s15   ;;  %s870_s14 = sphi %s915_s14, %s1109_s14   ;;  %s866_s13 = sphi %s913_s13, %s1112_s13   ;;  %s862_s12 = sphi %s911_s12, %s1111_s12  }
   0xc   : > { %s549_s19 = sadd.s32 4294967294, %s882_s17   ;;  %p65_p0 = scmp.ne.s32.totalorder %s866_s13, %s862_s12 }
   0xd   : > { %p66_p1 = scmp.eq.s32.totalorder %s942_s18, 0  ;;  %p138_p2 = scmp.eq.s32.totalorder %s942_s18, 1 }
   0xe   : > { %p144_p3 = scmp.eq.s32.totalorder %s549_s19, 1  ;;  %p550_p5 = scmp.ge.s32.totalorder %s882_s17, 1 }
   0xf   : > { %p951_p4 = por %p66_p1, %p65_p0  ;;  %p151_p7 = scmp.lt.s32.totalorder %s882_s17, 3 }
  0x10   : > { %p956_p6 = por %p144_p3, %p65_p0  ;;  %s1098_s2 = sld [smem:[#allocation18_spill]] }
  0x11   : > { %p964_p8 = pnand %p550_p5, %p151_p7  ;;  %s884_s26 = smov [#allocation8]  }
  0x12   : > { %s164_s27 = sshll.u32 %s884_s26, 4  ;;  %p552_p11 = scmp.ge.s32.totalorder %s882_s17, 2  ;;  %s165_s27 = int_to_ptr.vmem [resolvable:$true] %s164_s27 }
  0x13   : > { %p628_p9 = pneg %p964_p8  ;;  %s1089_s28 = smov 64  }
  0x14   : > { %s1090_s29 = smov 4   ;;  %s41_s30 = sadd.s32 1, %s878_s16 }
  0x15   : > { %p629_p10 = pnand %p628_p9, %p66_p1  ;;  %p43_p12 = scmp.ge.s32.totalorder %s41_s30, 2 }
  0x16   : > { %s162_s24 = sshll.u32 %s1098_s2, 4  ;;  %s52_s4 = sadd.s32 1, %s870_s14  ;;  %s163_s24 = int_to_ptr.hbm [resolvable:$true] %s162_s24 }
  0x17   : > { %631 = dma.hbm_to_vmem [thread:$0]  (!%p629_p10), %s163_s24, 1024, %s165_s27, [#allocation7], %s1089_s28, %s1089_s28, %s1090_s29  }
  0x18   : > { %p59_p13 = scmp.ne.s32.totalorder %s870_s14, %s866_s13  ;;  %p60_p0 = scmp.eq.s32.totalorder %s882_s17, 0 }
  0x19   : > { %s1116_s30 = smov (%p43_p12, %s41_s30), 0  ;;  %p644_p7 = scmp.lt.s32.totalorder %s882_s17, 2 }
  0x1a   : > { %1100 = sst [smem:[#allocation15_spill]] %s1116_s30  ;;  %p983_p3 = por %p60_p0, %p59_p13 }
  0x1b   : > { %p989_p5 = por %p138_p2, %p59_p13  ;;  %s45_s7 = ssub.s32 %s878_s16, %s1116_s30 }
  0x1c   : > { %p50_p9 = scmp.eq.s32.totalorder %s45_s7, 0  ;;  %s178_s8 = sand.u32 1, %s870_s14  }
  0x1d   : > { %s553_s9 = sshll.u32 %s178_s8, 4  ;;  %s606_s11 = sshll.u32 %s878_s16, 4 }
  0x1e   : > { %s998_s10 = scalar_select %p50_p9, %s870_s14, %s52_s4  }
  0x1f   : > { %s1104_s0 = sld [smem:[#allocation17_spill]]  ;;  %s182_s24 = scalar_lea.vmem [#allocation3], %s553_s9 }
  0x20   : > { %1103 = sst [smem:[#allocation16_spill]] %s998_s10  ;;  %s193_s26 = sshll.u32 %s182_s24, 4  ;;  %s194_s26 = int_to_ptr.vmem [resolvable:$true] %s193_s26 }
  0x21   : > { %p1006_p2 = pnand %p644_p7, %p983_p3  ;;  %s203_s7 = sand.u32 1, %s882_s17  }
  0x22   : > { %s179_s4 = scalar_lea.sflag [#allocation4], %s178_s8  ;;  %s887_s29 = smov 128  }
  0x23   : > { %s888_s2 = smov 8   ;;  %s556_s19 = sshll.u32 %s178_s8, 3 }
  0x24   : > { %s207_s24 = scalar_lea.vmem [#allocation6], %s556_s19  ;;  %s204_s30 = scalar_lea.sflag [#allocation7], %s203_s7 }
  0x25   : > { %s190_s23 = scalar_lea.hbm %s1104_s0, %s606_s11  ;;  %s607_s11 = sshll.u32 %s878_s16, 3 }
  0x26   : > { %s191_s27 = sshll.u32 %s190_s23, 4  ;;  %s212_s23 = scalar_lea.hbm %s1086_s1, %s607_s11  ;;  %s192_s27 = int_to_ptr.hbm [resolvable:$true] %s191_s27 }
  0x27   : > { %635 = dma.hbm_to_vmem [thread:$0]  (!%p1006_p2), %s192_s27, 256, %s194_s26, %s179_s4, %s887_s29, %s887_s29, %s888_s2  }
  0x28   : > { %s215_s5 = sshll.u32 %s207_s24, 4  ;;  %s213_s0 = sshll.u32 %s212_s23, 4  ;;  %s216_s5 = int_to_ptr.vmem [resolvable:$true] %s215_s5  ;;  %s214_s0 = int_to_ptr.hbm [resolvable:$true] %s213_s0 }
  0x29   : > { %s1106_s10 = smov 4   ;;  %s1107_s14 = smov 64  }
  0x2a   : > { %638 = dma.hbm_to_vmem [thread:$0]  (!%p1006_p2), %s214_s0, 128, %s216_s5, %s204_s30, %s1107_s14, %s1107_s14, %s1106_s10  }
  0x2b   : > { %227 = sbr.rel (%p964_p8) target bundleno = 332 (0x14c), region = 32  ;;  %s1025_s2 = sand.u32 (!%p964_p8), 1, %s866_s13  }
  0x2c   : > { %s560_s29 = sshll.u32 (!%p964_p8), %s1025_s2, 4  ;;  %s230_s8 = scalar_lea.sflag (!%p964_p8), [#allocation4], %s1025_s2 }
  0x2d   : > { %s233_s26 = scalar_lea.vmem (!%p964_p8), [#allocation3], %s560_s29 }
  0x30   : > { %845 = dma.done.wait (%p951_p4), %s230_s8, 256  }
  0x31   : > { %847 = vsyncadd (%p951_p4), %s230_s8, 4294967040  ;;  %s239_s0 = sand.u32 1, %s942_s18   ;;  %s561_s14 = sshll.u32 %s1025_s2, 3 }
  0x32   : > { %s240_s25 = scalar_lea.sflag [#allocation7], %s239_s0  ;;  %s243_s28 = scalar_lea.vmem [#allocation6], %s561_s14 }
  0x33   : > { %849 = dma.done.wait (%p951_p4), %s240_s25, 128  }
  0x34   : > { %851 = vsyncadd (%p951_p4), %s240_s25, 4294967168 }
  0x35   : > { %853 = dma.done.wait (%p66_p1), [#allocation7], 1024  }
  0x36   : > { %855 = vsyncadd (%p66_p1), [#allocation7], 4294966272  ;;  %v608_v0 = vld [vmem:[%s243_s28] sm:$0xff]  ;;  %v287_v2 = vld [vmem:[%s233_s26 + $0x8] sm:$0xff]  ;;  %vm299_vm0 = vcmask 130048   ;;  %s617_s18 = sshll.u32 %s874_s15, 4 }
  0x37   : > { %v286_v1 = vld [vmem:[%s233_s26] sm:$0xff]  ;;  %v616_v4 = vld [vmem:[#allocation8 + $0x38] sm:$0xff]  ;;  %310 = vmatpush.bf16.msra.mxu0 %v608_v0  ;;  %v614_v6 = vld [vmem:[#allocation8 + $0x28] sm:$0xff]  ;;  %s421_s10 = scalar_lea.hbm %s1088_s3, %s617_s18  ;;  %s276_s27 = scalar_lea.vmem [#allocation9], %s560_s29 }
  0x38   : > { %v288_v3 = vpack.c.bf16 %v287_v2, %v286_v1  ;;  %391 = vmatpush.bf16.msra.mxu1 %v616_v4  ;;  %v615_v5 = vld [vmem:[#allocation8 + $0x30] sm:$0xff]  ;;  %v613_v7 = vld [vmem:[#allocation8 + $0x20] sm:$0xff]  ;;  %v612_v8 = vld [vmem:[#allocation8 + $0x18] sm:$0xff]  ;;  %s422_s7 = sshll.u32 %s276_s27, 4  ;;  %s424_s4 = sshll.u32 %s421_s10, 4  ;;  %s423_s7 = int_to_ptr.vmem [resolvable:$true] %s422_s7  ;;  %s425_s4 = int_to_ptr.hbm [resolvable:$true] %s424_s4 }
  0x39   : > { %v611_v9 = vld [vmem:[#allocation8 + $0x10] sm:$0xff]  ;;  %v610_v10 = vld [vmem:[#allocation8 + $0x8] sm:$0xff]  ;;  %v609_v11 = vld [vmem:[#allocation8] sm:$0xff]  ;;  %s408_s19 = scalar_lea.sflag [#allocation5], %s1025_s2  ;;  %s806_s11 = sshra.s32 %s425_s4, 4  ;;  %s807_s11 = int_to_ptr.hbm [resolvable:$true] %s806_s11 }
  0x3a   : > { %568 = vmatmul.msk.bf16.vlgmr.msra.gmra.mxu0 %vm299_vm0, %v288_v3  ;;  %s808_s9 = scalar_lea.hbm %s807_s11, 16  ;;  %s812_s23 = scalar_lea.hbm %s1088_s3, 32 }
  0x3b   : > { %p809_p1 = scmp.ne.s32.totalorder %s807_s11, %s808_s9  ;;  %p813_p10 = scmp.lt.s32.totalorder %s807_s11, %s1088_s3 }
  0x3c   : > { %392 = vmatpush.bf16.msra.mxu1 %v615_v5  ;;  %p814_p12 = scmp.lt.s32.totalorder %s812_s23, %s808_s9 }
  0x3d   : > { %p810_p4 = pnand %p809_p1, %p989_p5 }
  0x3e   : > { %p815_p13 = por %p814_p12, %p813_p10 }
  0x3f   : > { %p811_p8 = pneg %p810_p4 }
  0x40   : > { %393 = vmatpush.bf16.msra.mxu1 %v614_v6 }
  0x41   : > { %p816_p0 = pnand %p815_p13, %p811_p8 }
  0x44   : > { %394 = vmatpush.bf16.msra.mxu1 %v613_v7 }
  0x48   : > { %395 = vmatpush.bf16.msra.mxu1 %v612_v8 }
  0x4c   : > { %396 = vmatpush.bf16.msra.mxu1 %v611_v9 }
  0x50   : > { %397 = vmatpush.bf16.msra.mxu1 %v610_v10 }
  0x54   : > { %398 = vmatpush.bf16.msra.mxu1 %v609_v11 }
  0xb7   : > { %v312_v12 = vpop.f32.mrf.mxu0 }
  0xbf   : > { %v314_v13 = vpop.f32.mrf.mxu0 }
  0xc0   : > { %v326_v14 = vpack.c.bf16 %v314_v13, %v312_v12 }
  0xc2   : > { %399 = vmatmul.bf16.vlgmr.msra.gmra.mxu1 %v326_v14 }
 0x13f   : > { %v400_v15 = vpop.f32.mrf.mxu1 }
 0x140   : > { %405 = vst [vmem:[%s276_s27] sm:$0xff] %v400_v15 }
 0x147   : > { %v402_v16 = vpop.f32.mrf.mxu1 }
 0x148   : > { %406 = vst [vmem:[%s276_s27 + $0x8] sm:$0xff] %v402_v16 }
 0x149   : > { %819 = shalt.err (!%p816_p0)
}
 0x14a   : > { %s889_s2 = smov 128   ;;  %s890_s29 = smov 8  }
 0x14b   : > { %626 = dma.vmem_to_hbm [thread:$0]  (%p989_p5), %s423_s7, 256, %s425_s4, %s408_s19, %s889_s2, %s889_s2, %s890_s29  }
 0x14c PF: > { %s439_s8 = sand.u32 1, %s862_s12   ;;  %p640_p3 = pnand %p552_p11, %p956_p6 }
 0x14d   : > { %s440_s26 = scalar_lea.sflag [#allocation5], %s439_s8 }
 0x14e   : > { %p641_p7 = pneg %p640_p3 }
 0x150   : > { %857 = dma.done.wait (%p641_p7), %s440_s26, 256  }
 0x151   : > { %859 = vsyncadd (%p641_p7), %s440_s26, 4294967040  ;;  %s22_s17 = sadd.s32 1, %s882_s17   ;;  %s1108_s0 = sld [smem:[#allocation14_spill]] }
 0x152   : > { %p19_p9 = scmp.ge.s32.totalorder %s22_s17, 4   ;;  %s1109_s14 = sld [smem:[#allocation16_spill]] }
 0x153   : > { %s1110_s6 = sld [smem:[#allocation15_spill]]  ;;  %s1111_s12 = smov %s866_s13 }
 0x154   : > { %s1113_s15 = smov %s878_s16 }
 0x155   :  { %21 = sbr.rel (!%p19_p9) target bundleno = 11 (0xb), region = 102 }
 0x157   : > { %s1112_s13 = smov %s1108_s0 }
 0x159   : > { %s1114_s16 = smov %s1110_s6 }
 0x15a   :  { %446 = vsyncpa [#allocation4], 1 }
 0x15b   :  { %448 = vsyncpa [#allocation4 + $0x1], 1 }
 0x15c   :  { %449 = vsyncpa [#allocation7], 1 }
 0x15d   :  { %451 = vsyncpa [#allocation7 + $0x1], 1 }
 0x15e   :  { %452 = vsyncpa [#allocation5], 1 }
 0x15f   :  { %454 = vsyncpa [#allocation5 + $0x1], 1 }

</bundles_post_ra>
